<compile_context>
chip_gen: v7x
topology: tpu7x:2x2x1
jax: 0.10.0
libtpu: 0.0.40
codegen_flags: <defaults>
</compile_context>

<pallas_src>
import jax
import jax.numpy as jnp
from jax.experimental import pallas as pl
from jax.experimental.pallas import tpu as pltpu

MARGIN = 1.0
LANES = 128
MAX_TILE_ROWS = 16384            # 8 MiB f32 per input block (v7x-friendly)
TARGET_BLOCK_BYTES = 8 << 20     # combined x+target HBM bytes per grid step


def _round_up(x, m):
    return ((x + m - 1) // m) * m


def _detect_num_cores():
    """Best-effort TensorCore count (2 on v7x, 1 on v5e/v6e). Falls back to 1."""
    try:
        info = pltpu.get_tpu_info()
    except Exception:
        return 1
    for name in ("num_cores", "num_tensorcores", "tensorcore_count",
                 "core_count", "num_tensor_cores"):
        v = getattr(info, name, None)
        if isinstance(v, int) and v > 0:
            return max(1, min(2, v))
    return 1


def _make_hinge_kernel(*, margin, total, t_steps, tile_rows, needs_mask):
    """Kernel factory: closes over static tiling parameters."""

    def kernel(x_ref, t_ref, o_ref):
        ti = pl.program_id(1)

        # Zero this core's resident (8, LANES) accumulator at the start of
        # its reduction pass (output block index is constant across ti).
        @pl.when(ti == 0)
        def _():
            o_ref[...] = jnp.zeros_like(o_ref)

        x = x_ref[...].astype(jnp.float32)
        t = t_ref[...].astype(jnp.float32)
        hinge = jnp.maximum(margin - x * t, 0.0)          # elementwise (VPU)

        if needs_mask:
            # Element-id mask against the TRUE element count: covers partial
            # edge blocks (stale VMEM rows), lane-pad of unaligned totals and
            # fully-out-of-range (clamped) steps. jnp.where never propagates
            # garbage/NaN from the unselected branch.
            # (int32 element ids: fine for totals < 2**31 elements.)
            row_start = (pl.program_id(0) * t_steps + ti) * tile_rows
            r = jax.lax.broadcasted_iota(jnp.int32, (tile_rows, LANES), 0)
            l = jax.lax.broadcasted_iota(jnp.int32, (tile_rows, LANES), 1)
            elem = (row_start + r) * LANES + l
            hinge = jnp.where(elem < total, hinge, 0.0)

        # Sublane-group reduction into an (8, LANES) accumulator: 8x shorter
        # per-lane chain than a (1, LANES) one; cross-lane reduce + mean are
        # deferred to the wrapper.
        o_ref[...] += jnp.sum(hinge.reshape(tile_rows // 8, 8, LANES), axis=0)

    return kernel


def hinge_loss(x, target, *, margin=MARGIN, tile_rows=None, num_cores=None,
               core_parallel=False):
    """Pallas HingeLoss forward. x, target: same shape (any rank, any size)."""
    assert x.shape == target.shape
    total = int(x.size)
    assert total > 0

    ix = jnp.dtype(x.dtype).itemsize
    it = jnp.dtype(target.dtype).itemsize
    # Sublane-packing granularity for the narrowest input dtype
    # (f32 -> 8, bf16 -> 16, int8 -> 32); also a multiple of 8 for f32.
    sub_mult = max(8, 32 // min(ix, it))

    if tile_rows is None:
        # Byte-budgeted tile: ~TARGET_BLOCK_BYTES of HBM traffic per grid step
        # across both inputs (f32 -> 8192 rows, bf16 -> 16384 rows).
        tile_rows = max(sub_mult, TARGET_BLOCK_BYTES // (LANES * (ix + it)))

    rows = pl.cdiv(total, LANES)            # logical 128-wide rows
    rows_arr = max(rows, sub_mult)          # tiny inputs: at least one packing unit
    max_tr = max(sub_mult, (rows_arr // sub_mult) * sub_mult)  # tile <= array rows
    tr = min(_round_up(int(tile_rows), sub_mult), max_tr, MAX_TILE_ROWS)
    tiles = pl.cdiv(rows_arr, tr)

    if num_cores is None:
        num_cores = _detect_num_cores()
    p = max(1, min(int(num_cores), tiles))
    t_steps = pl.cdiv(tiles, p)

    xf = jnp.ravel(x)
    tf = jnp.ravel(target)
    pad = rows_arr * LANES - total
    if pad:
        # Only when total is not a multiple of 128 (or the input is tiny):
        # <128 pad elements (+ up to one packing unit for sub-1Ki inputs).
        # Pad VALUES are irrelevant: the kernel masks on true element ids, so
        # this is exact for any margin.
        # TODO(synk): concatenate still rewrites the full array in HBM; a true
        # zero-copy ragged tail needs a 1-D ANY-space ref + manual DMA.
        xf = jnp.concatenate([xf, jnp.zeros((pad,), xf.dtype)])
        tf = jnp.concatenate([tf, jnp.zeros((pad,), tf.dtype)])
    x2 = xf.reshape(rows_arr, LANES)        # bitcast when pad == 0 (no copy)
    t2 = tf.reshape(rows_arr, LANES)

    # Mask only when the grid covers more elements than are valid.
    needs_mask = (p * t_steps * tr * LANES) != total

    # Clamp the block index when the per-core split over-covers the array
    # (avoids fully out-of-bounds blocks; those steps are fully masked).
    nblk = tiles
    if p * t_steps > nblk:
        def in_idx(pi, ti):
            return (jnp.minimum(pi * t_steps + ti, nblk - 1), 0)
    else:
        def in_idx(pi, ti):
            return (pi * t_steps + ti, 0)

    kernel = _make_hinge_kernel(margin=float(margin), total=total,
                                t_steps=t_steps, tile_rows=tr,
                                needs_mask=needs_mask)

    # VMEM budget: 2 double-buffered input blocks + slack, >= 32 MiB so large
    # tiles clear v5e's 16 MiB scoped default, capped well under v7x's 64 MiB.
    block_in_bytes = tr * LANES * (ix + it)
    vmem_limit = int(min(48 << 20, max(32 << 20, 2 * block_in_bytes + (8 << 20))))

    if core_parallel and p > 1:
        dims = (pltpu.CORE_PARALLEL, pltpu.ARBITRARY)   # v7x: force TC sharding
    else:
        dims = ("parallel", "arbitrary")

    cost = pl.CostEstimate(
        flops=4 * total,
        transcendentals=0,
        bytes_accessed=total * (ix + it) + p * 8 * LANES * 4,
    )

    partials = pl.pallas_call(
        kernel,
        out_shape=jax.ShapeDtypeStruct((p * 8, LANES), jnp.float32),
        grid_spec=pltpu.PrefetchScalarGridSpec(
            num_scalar_prefetch=0,
            grid=(p, t_steps),
            in_specs=[
                pl.BlockSpec((tr, LANES), in_idx),
                pl.BlockSpec((tr, LANES), in_idx),
            ],
            out_specs=pl.BlockSpec((8, LANES), lambda pi, ti: (pi, 0)),
        ),
        compiler_params=pltpu.CompilerParams(
            dimension_semantics=dims,
            vmem_limit_bytes=vmem_limit),
        cost_estimate=cost,
    )(x2, t2)

    # One tiny cross-lane reduce over (p*8, 128) partials, then the mean
    # over the TRUE element count.
    return jnp.sum(partials) / jnp.float32(total)


def hinge_loss_ref(x, target):
    return jnp.mean(jnp.maximum(
        MARGIN - x.astype(jnp.float32) * target.astype(jnp.float32), 0.0))


if __name__ == "__main__":
    key = jax.random.PRNGKey(0)
    ks = jax.random.split(key, 8)

    def make(shape, kx, kt, dtype=jnp.float32):
        xx = jax.random.normal(kx, shape, dtype=jnp.float32).astype(dtype)
        tt = jnp.where(jax.random.bernoulli(kt, 0.5, shape),
                       1.0, -1.0).astype(dtype)
        return xx, tt

    def check(out, ref, name):
        out = jax.block_until_ready(out)
        assert jnp.allclose(out, ref, rtol=1e-5, atol=1e-6), (name, out, ref)

    # 1) Small classifier-style output (B, C, H, W), lane-aligned (2048 elems):
    #    zero-copy reshape, no masking, single block.
    x1, t1 = make((2, 4, 16, 16), ks[0], ks[1])
    check(hinge_loss(x1, t1), hinge_loss_ref(x1, t1), "aligned")

    # 2) 128-aligned but tile-ragged rows (66 rows), forced small tile:
    #    exercises in-kernel masking + multi-step accumulation, NO padding.
    x2, t2 = make((2, 4, 32, 33), ks[2], ks[3])
    check(hinge_loss(x2, t2, tile_rows=32), hinge_loss_ref(x2, t2),
          "ragged-rows")

    # 3) Two-way core split with an odd tile count: exercises the clamped
    #    index_map and the fully-masked trailing step.
    check(hinge_loss(x2, t2, tile_rows=32, num_cores=2),
          hinge_loss_ref(x2, t2), "two-core")

    # 4) Total not a multiple of 128 (105 elems): tiny tail pad + element mask.
    x4, t4 = make((3, 5, 7), ks[4], ks[5])
    check(hinge_loss(x4, t4), hinge_loss_ref(x4, t4), "unaligned")

    # 5) bf16 inputs: halves HBM traffic; kernel still accumulates in f32.
    x5, t5 = make((2, 4, 16, 16), ks[6], ks[7], dtype=jnp.bfloat16)
    check(hinge_loss(x5, t5), hinge_loss_ref(x5, t5), "bf16")

    print("KERNEL_OK")
</pallas_src>

<mosaic_0001>
module attributes {stable_mosaic.version = 11 : i64} {
  func.func @kernel(%arg0: i32, %arg1: i32, %arg2: memref<16x128xf32, #tpu.memory_space<vmem>>, %arg3: memref<16x128xf32, #tpu.memory_space<vmem>>, %arg4: memref<8x128xf32, #tpu.memory_space<vmem>>) attributes {dimension_semantics = [#tpu.dimension_semantics<parallel>, #tpu.dimension_semantics<arbitrary>], iteration_bounds = array<i64: 1, 1>, scalar_prefetch = 0 : i64, scratch_operands = 0 : i64, tpu.core_type = #tpu.core_type<tc>, window_params = [{transform_indices = @transform_0, window_bounds = array<i64: 16, 128>}, {transform_indices = @transform_1, window_bounds = array<i64: 16, 128>}, {transform_indices = @transform_2, window_bounds = array<i64: 8, 128>}]} {
    %c0_i32 = arith.constant 0 : i32
    %0 = arith.cmpi eq, %arg1, %c0_i32 : i32
    %1 = arith.extui %0 : i1 to i32
    %c0_i32_0 = arith.constant 0 : i32
    %2 = arith.cmpi ne, %1, %c0_i32_0 : i32
    scf.if %2 {
      %cst_10 = arith.constant 0.000000e+00 : f32
      %15 = vector.broadcast %cst_10 : f32 to vector<8x128xf32>
      %c0_11 = arith.constant 0 : index
      %c0_12 = arith.constant 0 : index
      %16 = vector.load %arg4[%c0_11, %c0_12] : memref<8x128xf32, #tpu.memory_space<vmem>>, vector<8x128xf32>
      tpu.vector_store %arg4[%c0_11, %c0_12], %15 {strides = array<i32>} : memref<8x128xf32, #tpu.memory_space<vmem>>, vector<8x128xf32>,
    } else {
    }
    %c0 = arith.constant 0 : index
    %c0_1 = arith.constant 0 : index
    %3 = vector.load %arg2[%c0, %c0_1] : memref<16x128xf32, #tpu.memory_space<vmem>>, vector<16x128xf32>
    %c0_2 = arith.constant 0 : index
    %c0_3 = arith.constant 0 : index
    %4 = vector.load %arg3[%c0_2, %c0_3] : memref<16x128xf32, #tpu.memory_space<vmem>>, vector<16x128xf32>
    %5 = arith.mulf %3, %4 : vector<16x128xf32>
    %cst = arith.constant 1.000000e+00 : f32
    %6 = vector.broadcast %cst : f32 to vector<16x128xf32>
    %7 = arith.subf %6, %5 : vector<16x128xf32>
    %cst_4 = arith.constant 0.000000e+00 : f32
    %8 = vector.broadcast %cst_4 : f32 to vector<16x128xf32>
    %9 = arith.maximumf %7, %8 : vector<16x128xf32>
    %c0_5 = arith.constant 0 : index
    %c0_6 = arith.constant 0 : index
    %10 = vector.load %arg4[%c0_5, %c0_6] : memref<8x128xf32, #tpu.memory_space<vmem>>, vector<8x128xf32>
    %11 = vector.shape_cast %9 : vector<16x128xf32> to vector<2x8x128xf32>
    %cst_7 = arith.constant dense<0.000000e+00> : vector<8x128xf32>
    %12 = vector.multi_reduction <add>, %11, %cst_7 [0] : vector<2x8x128xf32> to vector<8x128xf32>
    %13 = arith.addf %10, %12 : vector<8x128xf32>
    %c0_8 = arith.constant 0 : index
    %c0_9 = arith.constant 0 : index
    %14 = vector.load %arg4[%c0_8, %c0_9] : memref<8x128xf32, #tpu.memory_space<vmem>>, vector<8x128xf32>
    tpu.vector_store %arg4[%c0_8, %c0_9], %13 {strides = array<i32>} : memref<8x128xf32, #tpu.memory_space<vmem>>, vector<8x128xf32>,
    return
  }
  func.func @transform_0(%arg0: i32, %arg1: i32) -> (i32, i32) {
    %c1_i32 = arith.constant 1 : i32
    %0 = arith.muli %arg0, %c1_i32 : i32
    %1 = arith.addi %0, %arg1 : i32
    %c0_i32 = arith.constant 0 : i32
    %c0_i32_0 = arith.constant 0 : i32
    return %1, %c0_i32 : i32, i32
  }
  func.func @transform_1(%arg0: i32, %arg1: i32) -> (i32, i32) {
    %c1_i32 = arith.constant 1 : i32
    %0 = arith.muli %arg0, %c1_i32 : i32
    %1 = arith.addi %0, %arg1 : i32
    %c0_i32 = arith.constant 0 : i32
    %c0_i32_0 = arith.constant 0 : i32
    return %1, %c0_i32 : i32, i32
  }
  func.func @transform_2(%arg0: i32, %arg1: i32) -> (i32, i32) {
    %c0_i32 = arith.constant 0 : i32
    %c0_i32_0 = arith.constant 0 : i32
    return %arg0, %c0_i32 : i32, i32
  }
}

</mosaic_0001>

<bundles_post_ra>
// kernel: tpu_custom_call.1
= control target key start
LH: loop header
LB: loop body
LE: loop exit
PB: predicated region body
PF: predicated region fallthrough
CT: control target
= control target key end

     0   :  { %7 = vsyncpa [#allocation3], 0  ;;  %s221_s0 = inlined_call_operand.hbm [shape: f32[16,128], index: 0, kind: input, shape index: {}]   ;;  %s222_s1 = inlined_call_operand.hbm [shape: f32[16,128], index: 1, kind: input, shape index: {}]   ;;  %s223_s2 = inlined_call_operand.hbm [shape: f32[8,128], index: 2, kind: output, shape index: {}]  }
   0x1   :  { %8 = vsyncpa [#allocation6], 0 }
   0x2   :  { %9 = vsyncpa [#allocation4], 0  ;;  %s165_s9 = smov [#allocation2]   ;;  %s93_s13 = scalar_lea.hbm %s221_s0, 256 }
   0x3   :  { %s19_s10 = sshll.u32 %s165_s9, 4  ;;  %p94_p0 = scmp.ne.s32.totalorder %s221_s0, %s93_s13  ;;  %s20_s10 = int_to_ptr.vmem [resolvable:$true] %s19_s10 }
   0x4   :  { %p97_p1 = scmp.lt.u32.totalorder %s93_s13, %s221_s0 }
   0x6   :  { %p99_p2 = pnand %p97_p1, %p94_p0 }
   0x8   :  { %102 = shalt.err (!%p99_p2)
}
   0x9   :  { %s103_s18 = scalar_lea.vmem %s20_s10, 256  ;;  %p108_p4 = scmp.lt.s32.totalorder %s20_s10, %s20_s10 }
   0xa   :  { %p104_p3 = scmp.ne.s32.totalorder %s20_s10, %s103_s18  ;;  %p109_p5 = scmp.lt.s32.totalorder %s103_s18, %s103_s18 }
   0xc   :  { %p110_p6 = por %p109_p5, %p108_p4 }
   0xe   :  { %p111_p7 = pnand %p110_p6, %p104_p3 }
  0x10   :  { %114 = shalt.err (!%p111_p7)
}
  0x11   :  { %s166_s19 = smov 128   ;;  %s167_s20 = smov 8  }
  0x12   :  { %25 = dma.hbm_to_vmem [thread:$0]  %s221_s0, 256, %s20_s10, [#allocation3], %s166_s19, %s166_s19, %s167_s20  }
  0x13   :  { %s168_s23 = smov [#allocation5]   ;;  %s115_s27 = scalar_lea.hbm %s222_s1, 256 }
  0x14   :  { %s35_s24 = sshll.u32 %s168_s23, 4  ;;  %p116_p8 = scmp.ne.s32.totalorder %s222_s1, %s115_s27  ;;  %s36_s24 = int_to_ptr.vmem [resolvable:$true] %s35_s24 }
  0x15   :  { %p119_p9 = scmp.lt.u32.totalorder %s115_s27, %s222_s1 }
  0x17   :  { %p121_p10 = pnand %p119_p9, %p116_p8 }
  0x19   :  { %124 = shalt.err (!%p121_p10)
}
  0x1a   :  { %s125_s4 = scalar_lea.vmem %s36_s24, 256  ;;  %p130_p12 = scmp.lt.s32.totalorder %s36_s24, %s36_s24 }
  0x1b   :  { %p126_p11 = scmp.ne.s32.totalorder %s36_s24, %s125_s4  ;;  %p131_p13 = scmp.lt.s32.totalorder %s125_s4, %s125_s4 }
  0x1d   :  { %p132_p0 = por %p131_p13, %p130_p12 }
  0x1f   :  { %p133_p1 = pnand %p132_p0, %p126_p11 }
  0x21   :  { %136 = shalt.err (!%p133_p1)
}
  0x22   :  { %41 = dma.hbm_to_vmem [thread:$0]  %s222_s1, 256, %s36_s24, [#allocation6], %s166_s19, %s166_s19, %s167_s20  }
  0x23   :  { %159 = dma.done.wait [#allocation3], 256  }
  0x24   :  { %160 = vsyncadd [#allocation3], 4294967040 }
  0x25   :  { %161 = dma.done.wait [#allocation6], 256  }
  0x26   :  { %162 = vsyncadd [#allocation6], 4294967040  ;;  %v57_v0 = vld [vmem:[#allocation2] sm:$0xff]  ;;  %v58_v1 = vld [vmem:[#allocation2 + $0x8] sm:$0xff]  ;;  %s169_s6 = smov [#allocation7]  }
  0x27   :  { %v59_v2 = vld [vmem:[#allocation5] sm:$0xff]  ;;  %v60_v3 = vld [vmem:[#allocation5 + $0x8] sm:$0xff]  ;;  %s77_s7 = sshll.u32 %s169_s6, 4  ;;  %s78_s7 = int_to_ptr.vmem [resolvable:$true] %s77_s7 }
  0x28   :  { %v61_v4 = vmul.f32 %v59_v2, %v57_v0  ;;  %v62_v5 = vmul.f32 %v60_v3, %v58_v1  ;;  %s137_s1 = scalar_lea.vmem %s78_s7, 128  ;;  %p142_p3 = scmp.lt.s32.totalorder %s78_s7, %s78_s7 }
  0x29   :  { %p138_p2 = scmp.ne.s32.totalorder %s78_s7, %s137_s1  ;;  %p143_p4 = scmp.lt.s32.totalorder %s137_s1, %s137_s1 }
  0x2a   :  { %v63_v6 = vsub.f32 1.0, %v61_v4  ;;  %v64_v7 = vsub.f32 1.0, %v62_v5 }
  0x2b   :  { %p144_p5 = por %p143_p4, %p142_p3 }
  0x2c   :  { %v65_v8 = vmax.f32 %v63_v6, 0.0  ;;  %v66_v9 = vmax.f32 %v64_v7, 0.0 }
  0x2d   :  { %p145_p6 = pnand %p144_p5, %p138_p2 }
  0x2e   :  { %v68_v10 = vadd.f32 %v66_v9, %v65_v8 }
  0x30   :  { %70 = vst [vmem:[#allocation7] sm:$0xff] %v68_v10 }
  0x31   :  { %148 = shalt.err (!%p145_p6)
}
  0x32   :  { %s149_s10 = scalar_lea.hbm %s223_s2, 128 }
  0x33   :  { %p150_p7 = scmp.ne.s32.totalorder %s223_s2, %s149_s10  ;;  %p153_p8 = scmp.lt.u32.totalorder %s149_s10, %s223_s2 }
  0x35   :  { %p155_p9 = pnand %p153_p8, %p150_p7 }
  0x37   :  { %158 = shalt.err (!%p155_p9)
}
  0x38   :  { %80 = dma.vmem_to_hbm [thread:$0]  %s78_s7, 128, %s223_s2, [#allocation4]  }
  0x39   :  { %163 = dma.done.wait [#allocation4], 128  }
  0x3a   :  { %164 = vsyncadd [#allocation4], 4294967168 }
  0x3b   :  { %84 = vsyncpa [#allocation3], 1 }
  0x3c   :  { %85 = vsyncpa [#allocation6], 1 }
  0x3d   :  { %86 = vsyncpa [#allocation4], 1 }

</bundles_post_ra>
